<compile_context>
chip_gen: v7x
topology: tpu7x:2x2x1
jax: 0.10.0
libtpu: 0.0.40
codegen_flags: <defaults>
</compile_context>

<pallas_src>
import functools

import jax
import jax.numpy as jnp
import numpy as np
from jax.experimental import pallas as pl
from jax.experimental.pallas import tpu as pltpu

_CHUNK = 512   # lane-chunk processed per inner-loop iteration
_LANE = 128


def _round_up(n, m):
    return ((n + m - 1) // m) * m


def _mlp_kernel(xt_ref, w1_ref, b1_ref, w2_ref, b2_ref, w3_ref, b3_ref, o_ref, *, chunk):
    # Weights/biases are tiny and VMEM-resident across the whole grid.
    w1 = w1_ref[...]            # (64, 2)  f32
    b1 = b1_ref[...]            # (64, 1)  f32
    w2 = w2_ref[...]            # (32, 64) bf16 (MXU operand)
    b2 = b2_ref[...]            # (32, 1)  f32
    w3 = w3_ref[...]            # (32, 1)  f32 (column form for the VPU/XLU layer 3)
    b3 = b3_ref[...]            # (1, 1)   f32

    n_chunks = o_ref.shape[-1] // chunk

    @pl.loop(0, n_chunks)
    def _(c):
        s = pl.multiple_of(c * chunk, chunk)
        xc = xt_ref[:, pl.ds(s, chunk)]                                # (2, chunk)

        # fc1 + ReLU (K=2): two VPU broadcast-FMAs instead of a degenerate MXU matmul.
        h1 = w1[:, 0:1] * xc[0:1, :] + w1[:, 1:2] * xc[1:2, :] + b1    # (64, chunk) f32
        h1 = jnp.maximum(h1, 0.0)

        # fc2 + ReLU: the only real matmul -> MXU, bf16 operands, f32 accumulate.
        h2 = jnp.dot(w2, h1.astype(jnp.bfloat16),
                     preferred_element_type=jnp.float32) + b2          # (32, chunk) f32
        h2 = jnp.maximum(h2, 0.0)

        # fc3 (M=1): VPU multiply + sublane (XLU) reduction instead of the MXU.
        h3 = jnp.sum(w3 * h2, axis=0, keepdims=True) + b3              # (1, chunk) f32

        # Sigmoid: exp on the EUP, exact divide (approx reciprocal dropped for accuracy).
        o_ref[:, pl.ds(s, chunk)] = (1.0 / (1.0 + jnp.exp(-h3))).astype(o_ref.dtype)


def cover_classifier_forward(x, params, *, block_batch=8192):
    """x: (B, 2) float32. params: PyTorch nn.Linear convention (out,in) weights, (out,) biases."""
    B = x.shape[0]

    # --- Tile selection: big lane tiles (amortize per-step overhead), >=2 grid steps
    # when the batch allows it (megacore on v7x), chunk-divisible tiles.
    Bp0 = _round_up(B, _LANE)
    if Bp0 <= _CHUNK:
        TB = Bp0                                            # single small tile
    else:
        tb_cap = _round_up(pl.cdiv(Bp0, 2), _CHUNK)         # keep >= 2 grid steps
        TB = max(_CHUNK, min(_round_up(block_batch, _CHUNK), tb_cap))
    chunk = min(_CHUNK, TB)                                 # TB % chunk == 0 by construction
    Bp = _round_up(B, TB)
    grid = Bp // TB

    # Feature-major input (batch on the 128-lane axis); single transpose+pad, padded
    # columns are zeros and sliced off below.
    xt = x.T.astype(jnp.float32)
    if Bp != B:
        xt = jnp.pad(xt, ((0, 0), (0, Bp - B)))

    # Kernel-layout parameters.
    w1 = params["w1"].astype(jnp.float32)                   # (64, 2)
    b1 = params["b1"].reshape(64, 1).astype(jnp.float32)
    w2 = params["w2"].astype(jnp.bfloat16)                  # (32, 64) bf16 MXU operand
    b2 = params["b2"].reshape(32, 1).astype(jnp.float32)
    w3 = params["w3"].reshape(32, 1).astype(jnp.float32)    # (32, 1) column
    b3 = params["b3"].reshape(1, 1).astype(jnp.float32)

    resident = lambda a: pl.BlockSpec(a.shape, lambda i: (0,) * a.ndim)

    out_t = pl.pallas_call(
        functools.partial(_mlp_kernel, chunk=chunk),
        out_shape=jax.ShapeDtypeStruct((1, Bp), jnp.float32),
        grid=(grid,),
        in_specs=[
            pl.BlockSpec((2, TB), lambda i: (0, i)),        # x tile, double-buffered
            resident(w1), resident(b1),
            resident(w2), resident(b2),
            resident(w3), resident(b3),
        ],
        out_specs=pl.BlockSpec((1, TB), lambda i: (0, i)),  # lane-dense stores
        compiler_params=pltpu.CompilerParams(
            dimension_semantics=("parallel",)),             # v7x: shard batch over 2 TCs
    )(xt, w1, b1, w2, b2, w3, b3)

    # Back to PyTorch-style (B, 1).
    return out_t[0, :B].reshape(B, 1)


def init_params(key):
    """Deterministic init matching the PyTorch module (nn.Linear default uniform init)."""
    k1, k2, k3, k4, k5, k6 = jax.random.split(key, 6)

    def linear(kw, kb, fan_in, fan_out):
        bound = 1.0 / float(np.sqrt(fan_in))
        w = jax.random.uniform(kw, (fan_out, fan_in), jnp.float32, -bound, bound)
        b = jax.random.uniform(kb, (fan_out,), jnp.float32, -bound, bound)
        return w, b

    w1, b1 = linear(k1, k2, 2, 64)
    w2, b2 = linear(k3, k4, 64, 32)
    w3, b3 = linear(k5, k6, 32, 1)
    return {"w1": w1, "b1": b1, "w2": w2, "b2": b2, "w3": w3, "b3": b3}


def _reference(x, p):
    """Precision-independent float64 NumPy reference of the PyTorch forward pass."""
    x64 = np.asarray(x, np.float64)
    w1, b1 = np.asarray(p["w1"], np.float64), np.asarray(p["b1"], np.float64)
    w2, b2 = np.asarray(p["w2"], np.float64), np.asarray(p["b2"], np.float64)
    w3, b3 = np.asarray(p["w3"], np.float64), np.asarray(p["b3"], np.float64)
    h1 = np.maximum(x64 @ w1.T + b1, 0.0)
    h2 = np.maximum(h1 @ w2.T + b2, 0.0)
    z = h2 @ w3.T + b3
    return 1.0 / (1.0 + np.exp(-z))


if __name__ == "__main__":
    key = jax.random.PRNGKey(0)
    kp, kx1, kx2 = jax.random.split(key, 3)
    params = init_params(kp)

    # Small demo batch (single tile, single chunk).
    B = 16
    x = jax.random.normal(kx1, (B, 2), jnp.float32)
    out = jax.block_until_ready(cover_classifier_forward(x, params))
    ref = _reference(x, params)
    assert out.shape == (B, 1)
    # Tolerance sized for bf16 fc2 operands (worst-case output error ~2e-3).
    assert np.allclose(np.asarray(out), ref, atol=5e-3, rtol=5e-3), \
        "mismatch vs reference (small batch)"

    # Moderate batch exercising the multi-tile grid + chunked inner loop + padding path.
    B2 = 1600
    x2 = jax.random.normal(kx2, (B2, 2), jnp.float32)
    out2 = jax.block_until_ready(cover_classifier_forward(x2, params, block_batch=512))
    ref2 = _reference(x2, params)
    assert out2.shape == (B2, 1)
    assert np.allclose(np.asarray(out2), ref2, atol=5e-3, rtol=5e-3), \
        "mismatch vs reference (tiled batch)"

    print("KERNEL_OK")
</pallas_src>

<mosaic_0001>
module attributes {stable_mosaic.version = 11 : i64} {
  func.func @_mlp_kernel(%arg0: i32, %arg1: memref<2x128xf32, #tpu.memory_space<vmem>>, %arg2: memref<64x2xf32, #tpu.memory_space<vmem>>, %arg3: memref<64x1xf32, #tpu.memory_space<vmem>>, %arg4: memref<32x64xbf16, #tpu.memory_space<vmem>>, %arg5: memref<32x1xf32, #tpu.memory_space<vmem>>, %arg6: memref<32x1xf32, #tpu.memory_space<vmem>>, %arg7: memref<1x1xf32, #tpu.memory_space<vmem>>, %arg8: memref<1x128xf32, #tpu.memory_space<vmem>>) attributes {dimension_semantics = [#tpu.dimension_semantics<parallel>], iteration_bounds = array<i64: 1>, scalar_prefetch = 0 : i64, scratch_operands = 0 : i64, tpu.core_type = #tpu.core_type<tc>, window_params = [{transform_indices = @transform_0, window_bounds = array<i64: 2, 128>}, {pipeline_mode = #tpu.pipeline_mode<synchronous>, transform_indices = @transform_1, window_bounds = array<i64: 64, 2>}, {pipeline_mode = #tpu.pipeline_mode<synchronous>, transform_indices = @transform_2, window_bounds = array<i64: 64, 1>}, {pipeline_mode = #tpu.pipeline_mode<synchronous>, transform_indices = @transform_3, window_bounds = array<i64: 32, 64>}, {pipeline_mode = #tpu.pipeline_mode<synchronous>, transform_indices = @transform_4, window_bounds = array<i64: 32, 1>}, {pipeline_mode = #tpu.pipeline_mode<synchronous>, transform_indices = @transform_5, window_bounds = array<i64: 32, 1>}, {pipeline_mode = #tpu.pipeline_mode<synchronous>, transform_indices = @transform_6, window_bounds = array<i64: 1, 1>}, {transform_indices = @transform_7, window_bounds = array<i64: 1, 128>}]} {
    %c0 = arith.constant 0 : index
    %c0_0 = arith.constant 0 : index
    %0 = vector.load %arg2[%c0, %c0_0] : memref<64x2xf32, #tpu.memory_space<vmem>>, vector<64x2xf32>
    %c0_1 = arith.constant 0 : index
    %c0_2 = arith.constant 0 : index
    %1 = vector.load %arg3[%c0_1, %c0_2] : memref<64x1xf32, #tpu.memory_space<vmem>>, vector<64x1xf32>
    %c0_3 = arith.constant 0 : index
    %c0_4 = arith.constant 0 : index
    %2 = vector.load %arg4[%c0_3, %c0_4] : memref<32x64xbf16, #tpu.memory_space<vmem>>, vector<32x64xbf16>
    %c0_5 = arith.constant 0 : index
    %c0_6 = arith.constant 0 : index
    %3 = vector.load %arg5[%c0_5, %c0_6] : memref<32x1xf32, #tpu.memory_space<vmem>>, vector<32x1xf32>
    %c0_7 = arith.constant 0 : index
    %c0_8 = arith.constant 0 : index
    %4 = vector.load %arg6[%c0_7, %c0_8] : memref<32x1xf32, #tpu.memory_space<vmem>>, vector<32x1xf32>
    %c0_9 = arith.constant 0 : index
    %c0_10 = arith.constant 0 : index
    %5 = vector.load %arg7[%c0_9, %c0_10] : memref<1x1xf32, #tpu.memory_space<vmem>>, vector<1x1xf32>
    %c0_i32 = arith.constant 0 : i32
    %c1_i32 = arith.constant 1 : i32
    %6 = arith.muli %c0_i32, %c1_i32 : i32
    %c0_i32_11 = arith.constant 0 : i32
    %7 = arith.addi %c0_i32_11, %6 : i32
    %c128_i32 = arith.constant 128 : i32
    %8 = arith.muli %7, %c128_i32 : i32
    %9 = tpu.assume_multiple %8, 128 : i32
    %c0_12 = arith.constant 0 : index
    %10 = arith.index_cast %9 : i32 to index
    %11 = vector.load %arg1[%c0_12, %10] : memref<2x128xf32, #tpu.memory_space<vmem>>, vector<2x128xf32>
    %12 = vector.extract_strided_slice %0 {offsets = [0, 0], sizes = [64, 1], strides = [1, 1]} : vector<64x2xf32> to vector<64x1xf32>
    %13 = vector.extract_strided_slice %11 {offsets = [0, 0], sizes = [1, 128], strides = [1, 1]} : vector<2x128xf32> to vector<1x128xf32>
    %14 = vector.broadcast %12 : vector<64x1xf32> to vector<64x128xf32>
    %15 = vector.broadcast %13 : vector<1x128xf32> to vector<64x128xf32>
    %16 = arith.mulf %14, %15 : vector<64x128xf32>
    %17 = vector.extract_strided_slice %0 {offsets = [0, 1], sizes = [64, 1], strides = [1, 1]} : vector<64x2xf32> to vector<64x1xf32>
    %18 = vector.extract_strided_slice %11 {offsets = [1, 0], sizes = [1, 128], strides = [1, 1]} : vector<2x128xf32> to vector<1x128xf32>
    %19 = vector.broadcast %17 : vector<64x1xf32> to vector<64x128xf32>
    %20 = vector.broadcast %18 : vector<1x128xf32> to vector<64x128xf32>
    %21 = arith.mulf %19, %20 : vector<64x128xf32>
    %22 = arith.addf %16, %21 : vector<64x128xf32>
    %23 = vector.broadcast %1 : vector<64x1xf32> to vector<64x128xf32>
    %24 = arith.addf %22, %23 : vector<64x128xf32>
    %cst = arith.constant 0.000000e+00 : f32
    %25 = vector.broadcast %cst : f32 to vector<64x128xf32>
    %26 = arith.maximumf %24, %25 : vector<64x128xf32>
    %27 = arith.truncf %26 : vector<64x128xf32> to vector<64x128xbf16>
    %cst_13 = arith.constant dense<0.000000e+00> : vector<32x128xf32>
    %28 = tpu.matmul %2, %27, %cst_13 {dimension_numbers = #tpu.dot_dimension_numbers<[1], [0], [0], [1], [0, 0, 1, 1], [], []>} : vector<32x64xbf16>, vector<64x128xbf16>, vector<32x128xf32> -> vector<32x128xf32>
    %29 = vector.broadcast %3 : vector<32x1xf32> to vector<32x128xf32>
    %30 = arith.addf %28, %29 : vector<32x128xf32>
    %cst_14 = arith.constant 0.000000e+00 : f32
    %31 = vector.broadcast %cst_14 : f32 to vector<32x128xf32>
    %32 = arith.maximumf %30, %31 : vector<32x128xf32>
    %33 = vector.broadcast %4 : vector<32x1xf32> to vector<32x128xf32>
    %34 = arith.mulf %33, %32 : vector<32x128xf32>
    %cst_15 = arith.constant dense<0.000000e+00> : vector<128xf32>
    %35 = vector.multi_reduction <add>, %34, %cst_15 [0] : vector<32x128xf32> to vector<128xf32>
    %36 = vector.shape_cast %35 : vector<128xf32> to vector<1x128xf32>
    %37 = vector.broadcast %5 : vector<1x1xf32> to vector<1x128xf32>
    %38 = arith.addf %36, %37 : vector<1x128xf32>
    %cst_16 = arith.constant 0.000000e+00 : f32
    %39 = vector.broadcast %cst_16 : f32 to vector<1x128xf32>
    %40 = arith.subf %39, %38 : vector<1x128xf32>
    %41 = math.exp %40 : vector<1x128xf32>
    %cst_17 = arith.constant 1.000000e+00 : f32
    %42 = vector.broadcast %cst_17 : f32 to vector<1x128xf32>
    %43 = arith.addf %42, %41 : vector<1x128xf32>
    %cst_18 = arith.constant 1.000000e+00 : f32
    %44 = vector.broadcast %cst_18 : f32 to vector<1x128xf32>
    %45 = arith.divf %44, %43 : vector<1x128xf32>
    %c0_19 = arith.constant 0 : index
    %46 = arith.index_cast %9 : i32 to index
    %47 = vector.load %arg8[%c0_19, %46] : memref<1x128xf32, #tpu.memory_space<vmem>>, vector<1x128xf32>
    tpu.vector_store %arg8[%c0_19, %46], %45 {strides = array<i32>} : memref<1x128xf32, #tpu.memory_space<vmem>>, vector<1x128xf32>,
    %c1_i32_20 = arith.constant 1 : i32
    return
  }
  func.func @transform_0(%arg0: i32) -> (i32, i32) {
    %c0_i32 = arith.constant 0 : i32
    %c0_i32_0 = arith.constant 0 : i32
    return %c0_i32, %arg0 : i32, i32
  }
  func.func @transform_1(%arg0: i32) -> (i32, i32) {
    %c0_i32 = arith.constant 0 : i32
    %c0_i32_0 = arith.constant 0 : i32
    %c0_i32_1 = arith.constant 0 : i32
    return %c0_i32, %c0_i32_0 : i32, i32
  }
  func.func @transform_2(%arg0: i32) -> (i32, i32) {
    %c0_i32 = arith.constant 0 : i32
    %c0_i32_0 = arith.constant 0 : i32
    %c0_i32_1 = arith.constant 0 : i32
    return %c0_i32, %c0_i32_0 : i32, i32
  }
  func.func @transform_3(%arg0: i32) -> (i32, i32) {
    %c0_i32 = arith.constant 0 : i32
    %c0_i32_0 = arith.constant 0 : i32
    %c0_i32_1 = arith.constant 0 : i32
    return %c0_i32, %c0_i32_0 : i32, i32
  }
  func.func @transform_4(%arg0: i32) -> (i32, i32) {
    %c0_i32 = arith.constant 0 : i32
    %c0_i32_0 = arith.constant 0 : i32
    %c0_i32_1 = arith.constant 0 : i32
    return %c0_i32, %c0_i32_0 : i32, i32
  }
  func.func @transform_5(%arg0: i32) -> (i32, i32) {
    %c0_i32 = arith.constant 0 : i32
    %c0_i32_0 = arith.constant 0 : i32
    %c0_i32_1 = arith.constant 0 : i32
    return %c0_i32, %c0_i32_0 : i32, i32
  }
  func.func @transform_6(%arg0: i32) -> (i32, i32) {
    %c0_i32 = arith.constant 0 : i32
    %c0_i32_0 = arith.constant 0 : i32
    %c0_i32_1 = arith.constant 0 : i32
    return %c0_i32, %c0_i32_0 : i32, i32
  }
  func.func @transform_7(%arg0: i32) -> (i32, i32) {
    %c0_i32 = arith.constant 0 : i32
    %c0_i32_0 = arith.constant 0 : i32
    return %c0_i32, %arg0 : i32, i32
  }
}

</mosaic_0001>

<bundles_post_ra>
// kernel: tpu_custom_call.1
= control target key start
LH: loop header
LB: loop body
LE: loop exit
PB: predicated region body
PF: predicated region fallthrough
CT: control target
= control target key end

     0   :  { %s592_s0 = inlined_call_operand.vmem [shape: f32[2,128], index: 0, kind: input, shape index: {}]   ;;  %s593_s1 = inlined_call_operand.vmem [shape: f32[64,2], index: 1, kind: input, shape index: {}]   ;;  %s594_s2 = inlined_call_operand.vmem [shape: f32[64,1], index: 2, kind: input, shape index: {}]   ;;  %s595_s3 = inlined_call_operand.vmem [shape: bf16[32,64], index: 3, kind: input, shape index: {}]   ;;  %s596_s4 = inlined_call_operand.vmem [shape: f32[32,1], index: 4, kind: input, shape index: {}]   ;;  %s597_s5 = inlined_call_operand.vmem [shape: f32[32,1], index: 5, kind: input, shape index: {}]   ;;  %s598_s6 = inlined_call_operand.<no memory space> [shape: f32[1,1], index: 6, kind: input, shape index: {}]   ;;  %s599_s7 = inlined_call_operand.hbm [shape: f32[1,128], index: 7, kind: output, shape index: {}]  }
   0x1   :  { %v12_v0 = vstv %s598_s6 }
   0x2   :  { %13 = vst [vmem:[#allocation2] sm:$0x1] %v12_v0 }
   0x3   :  { %v32_v1 = vld [vmem:[%s593_s1 + $0x10] sm:$0xff]  ;;  %v30_v2 = vld [vmem:[%s593_s1] sm:$0xff]  ;;  %v443_v3 = vmov 1   ;;  %v31_v5 = vld [vmem:[%s593_s1 + $0x8] sm:$0xff]  ;;  %v444_v8 = vmov 0  }
   0x4   :  { %405 = vset.pattern.permute.xlu0 %v443_v3  ;;  %403 = vset.pattern.permute.xlu1 %v443_v3  ;;  %v34_v4 = vld [vmem:[%s593_s1 + $0x20] sm:$0xff]  ;;  %v36_v6 = vld [vmem:[%s593_s1 + $0x30] sm:$0xff]  ;;  %v33_v7 = vld [vmem:[%s593_s1 + $0x18] sm:$0xff] }
   0x5   :  { %121 = vperm.xlu0 %405, %v32_v1   ;;  %113 = vperm.xlu1 %403, %v30_v2  }
   0x9   :  { %129 = vperm.xlu0 %405, %v34_v4   ;;  %117 = vperm.xlu1 %403, %v31_v5  }
   0xd   :  { %137 = vperm.xlu0 %405, %v36_v6   ;;  %404 = vset.pattern.permute.xlu1 %v444_v8 }
   0xe   :  { %14 = vsyncpa [#allocation4], 0  ;;  %77 = vperm.xlu1 %404, %v33_v7   ;;  %v38_v9 = vld [vmem:[%s594_s2] sm:$0xff]  ;;  %v39_v10 = vld [vmem:[%s594_s2 + $0x8] sm:$0xff]  ;;  %vm254_vm0 = vcmask 523264   ;;  %v100_v31 = vlaneseq }
   0xf   :  { %v35_v11 = vld [vmem:[%s593_s1 + $0x28] sm:$0xff]  ;;  %v41_v12 = vld [vmem:[%s594_s2 + $0x18] sm:$0xff]  ;;  %v50_v14 = vld [vmem:[%s596_s4] sm:$0xff] }
  0x10   :  { %v43_v13 = vld [vmem:[%s594_s2 + $0x28] sm:$0xff]  ;;  %v40_v15 = vld [vmem:[%s594_s2 + $0x10] sm:$0xff]  ;;  %v54_v17 = vld [vmem:[%s597_s5] sm:$0xff]  ;;  %v565_v34 = vshrl.u32 %v100_v31, 7 }
  0x11   :  { %410 = vset.pattern.permute.xlu0 %v444_v8  ;;  %v52_v16 = vld [vmem:[%s596_s4 + $0x10] sm:$0xff]  ;;  %v37_v18 = vld [vmem:[%s593_s1 + $0x38] sm:$0xff]  ;;  %v58_v20 = vld [vmem:[#allocation2] sm:$0x1] }
  0x12   :  { %62 = vperm.xlu0 %410, %v30_v2   ;;  %406 = vset.pattern.permute.xlu1 %v443_v3  ;;  %v56_v19 = vld [vmem:[%s597_s5 + $0x10] sm:$0xff]  ;;  %v42_v21 = vld [vmem:[%s594_s2 + $0x20] sm:$0xff]  ;;  %v45_v23 = vld [vmem:[%s594_s2 + $0x38] sm:$0xff]  ;;  %v146_v37 = vsub.s32 1, %v565_v34  ;;  %v102_v38 = vsub.s32 0, %v565_v34 }
  0x13   :  { %125 = vperm.xlu1 %406, %v33_v7   ;;  %v44_v22 = vld [vmem:[%s594_s2 + $0x30] sm:$0xff]  ;;  %v51_v24 = vld [vmem:[%s596_s4 + $0x8] sm:$0xff]  ;;  %v53_v25 = vld [vmem:[%s596_s4 + $0x18] sm:$0xff] }
  0x14   :  { %v413_v26 = vld [vmem:[%s595_s3] sm:$0xff]   ;;  %v55_v27 = vld [vmem:[%s597_s5 + $0x8] sm:$0xff]  ;;  %v57_v28 = vld [vmem:[%s597_s5 + $0x18] sm:$0xff] }
  0x15   :  { %396 = vmatprep.mubr.msk.bf16.mxu0 %vm254_vm0, %v413_v26  ;;  %v59_v39 = vld [vmem:[%s592_s0] sm:$0x3] }
  0x16   :  { %67 = vperm.xlu0 %410, %v31_v5   ;;  %v147_v42 = vrot.slane %v59_v39, %v146_v37  ;;  %v103_v43 = vrot.slane %v59_v39, %v102_v38 }
  0x17   :  { %407 = vset.pattern.permute.xlu1 %v444_v8 }
  0x18   :  { %166 = vperm.xlu1 %407, %v38_v9  }
  0x1a   :  { %72 = vperm.xlu0 %410, %v32_v1  }
  0x1c   :  { %82 = vperm.xlu1 %407, %v34_v4  }
  0x1e   :  { %171 = vperm.xlu0 %410, %v39_v10  }
  0x20   :  { %87 = vperm.xlu1 %407, %v35_v11  }
  0x22   :  { %181 = vperm.xlu0 %410, %v41_v12  }
  0x24   :  { %408 = vset.pattern.permute.xlu1 %v443_v3 }
  0x25   :  { %133 = vperm.xlu1 %408, %v35_v11  }
  0x26   :  { %191 = vperm.xlu0 %410, %v43_v13  }
  0x29   :  { %409 = vset.pattern.permute.xlu1 %v444_v8 }
  0x2a   :  { %226 = vperm.xlu0 %410, %v50_v14   ;;  %176 = vperm.xlu1 %409, %v40_v15  }
  0x2e   :  { %236 = vperm.xlu0 %410, %v52_v16   ;;  %92 = vperm.xlu1 %409, %v36_v6  }
  0x32   :  { %316 = vperm.xlu0 %410, %v54_v17   ;;  %97 = vperm.xlu1 %409, %v37_v18  }
  0x36   :  { %326 = vperm.xlu0 %410, %v56_v19   ;;  %411 = vset.pattern.permute.xlu1 %v443_v3 }
  0x37   :  { %141 = vperm.xlu1 %411, %v37_v18  }
  0x3a   :  { %349 = vperm.xlu0 %410, %v58_v20  }
  0x3b   :  { %412 = vset.pattern.permute.xlu1 %v444_v8 }
  0x3c   :  { %186 = vperm.xlu1 %412, %v42_v21  }
  0x40   :  { %196 = vperm.xlu1 %412, %v44_v22  }
  0x44   :  { %201 = vperm.xlu1 %412, %v45_v23  }
  0x48   :  { %231 = vperm.xlu1 %412, %v51_v24  }
  0x4c   :  { %241 = vperm.xlu1 %412, %v53_v25  }
  0x50   :  { %321 = vperm.xlu1 %412, %v55_v27  }
  0x54   :  { %331 = vperm.xlu1 %412, %v57_v28  }
  0x84   :  { %v114_v29 = vpop.permute.xlu1 %113  ;;  %v122_v30 = vpop.permute.xlu0 %121 }
  0x85   :  { %v148_v47 = vmul.f32 %v147_v42, %v114_v29  ;;  %v150_v62 = vmul.f32 %v147_v42, %v122_v30 }
  0x88   :  { %v118_v32 = vpop.permute.xlu1 %117  ;;  %v130_v33 = vpop.permute.xlu0 %129 }
  0x89   :  { %v149_v50 = vmul.f32 %v147_v42, %v118_v32  ;;  %v152_v15 = vmul.f32 %v147_v42, %v130_v33 }
  0x8c   :  { %v138_v35 = vpop.permute.xlu0 %137 }
  0x8d   :  { %v78_v36 = vpop.permute.xlu1 %77  ;;  %v154_v25 = vmul.f32 %v147_v42, %v138_v35  ;;  %v414_v35 = vld [vmem:[%s595_s3 + $0x8] sm:$0xff]   ;;  %s445_s3 = smov [#allocation3]  }
  0x8e   :  { %v107_v63 = vmul.f32 %v103_v43, %v78_v36  ;;  %s370_s27 = sshll.u32 %s445_s3, 4  ;;  %s371_s27 = int_to_ptr.vmem [resolvable:$true] %s370_s27 }
  0x8f   :  { %s419_s28 = scalar_lea.vmem %s371_s27, 16  ;;  %s423_s29 = scalar_lea.vmem %s371_s27, 32 }
  0x90   :  { %p420_p0 = scmp.ne.s32.totalorder %s371_s27, %s419_s28  ;;  %p424_p1 = scmp.lt.s32.totalorder %s371_s27, %s371_s27 }
  0x91   :  { %v63_v40 = vpop.permute.xlu0 %62  ;;  %p425_p2 = scmp.lt.s32.totalorder %s423_s29, %s419_s28 }
  0x92   :  { %v126_v41 = vpop.permute.xlu1 %125  ;;  %v104_v45 = vmul.f32 %v103_v43, %v63_v40 }
  0x93   :  { %v151_v60 = vmul.f32 %v147_v42, %v126_v41  ;;  %p426_p3 = por %p425_p2, %p424_p1 }
  0x94   :  { %v156_v51 = vadd.f32 %v148_v47, %v104_v45 }
  0x95   :  { %v68_v44 = vpop.permute.xlu0 %67  ;;  %v159_v3 = vadd.f32 %v151_v60, %v107_v63  ;;  %p427_p4 = pnand %p426_p3, %p420_p0 }
  0x96   :  { %v105_v48 = vmul.f32 %v103_v43, %v68_v44 }
  0x97   :  { %v167_v46 = vpop.permute.xlu1 %166 }
  0x98   :  { %v204_v53 = vadd.f32 %v167_v46, %v156_v51  ;;  %v157_v54 = vadd.f32 %v149_v50, %v105_v48 }
  0x99   :  { %v73_v49 = vpop.permute.xlu0 %72 }
  0x9a   :  { %v212_v58 = vmax.f32 %v204_v53, 0.0  ;;  %v106_v0 = vmul.f32 %v103_v43, %v73_v49 }
  0x9b   :  { %v83_v52 = vpop.permute.xlu1 %82 }
  0x9c   :  { %v158_v5 = vadd.f32 %v150_v62, %v106_v0  ;;  %v108_v16 = vmul.f32 %v103_v43, %v83_v52 }
  0x9d   :  { %v172_v55 = vpop.permute.xlu0 %171 }
  0x9e   :  { %v205_v56 = vadd.f32 %v172_v55, %v157_v54  ;;  %v160_v21 = vadd.f32 %v152_v15, %v108_v16 }
  0x9f   :  { %v88_v57 = vpop.permute.xlu1 %87 }
  0xa0   :  { %v213_v59 = vmax.f32 %v205_v56, 0.0  ;;  %v109_v14 = vmul.f32 %v103_v43, %v88_v57 }
  0xa1   :  { %v182_v2 = vpop.permute.xlu0 %181 }
  0xa2   :  { %v220_v61 = vpack.c.bf16 %v213_v59, %v212_v58  ;;  %v207_v4 = vadd.f32 %v182_v2, %v159_v3 }
  0xa4   :  { %388 = vmatprep.subr.bf16.mxu0 %v220_v61  ;;  %v134_v1 = vpop.permute.xlu1 %133  ;;  %v215_v8 = vmax.f32 %v207_v4, 0.0 }
  0xa5   :  { %389 = vmatpush3.bf16.msra.mxu0 %v220_v61  ;;  %v153_v13 = vmul.f32 %v147_v42, %v134_v1  ;;  %v192_v19 = vpop.permute.xlu0 %191 }
  0xa7   :  { %v161_v17 = vadd.f32 %v153_v13, %v109_v14 }
  0xa9   :  { %v177_v6 = vpop.permute.xlu1 %176  ;;  %v209_v20 = vadd.f32 %v192_v19, %v161_v17 }
  0xaa   :  { %v206_v7 = vadd.f32 %v177_v6, %v158_v5 }
  0xab   :  { %v217_v26 = vmax.f32 %v209_v20, 0.0 }
  0xac   :  { %v214_v9 = vmax.f32 %v206_v7, 0.0 }
  0xad   :  { %v93_v10 = vpop.permute.xlu1 %92 }
  0xae   :  { %v221_v11 = vpack.c.bf16 %v215_v8, %v214_v9  ;;  %v110_v23 = vmul.f32 %v103_v43, %v93_v10 }
  0xb0   :  { %390 = vmatprep.subr.bf16.mxu0 %v221_v11  ;;  %v162_v32 = vadd.f32 %v154_v25, %v110_v23 }
  0xb1   :  { %391 = vmatpush3.bf16.msra.mxu0 %v221_v11  ;;  %v98_v12 = vpop.permute.xlu1 %97 }
  0xb2   :  { %v111_v30 = vmul.f32 %v103_v43, %v98_v12 }
  0xb6   :  { %v142_v18 = vpop.permute.xlu1 %141 }
  0xb7   :  { %v155_v27 = vmul.f32 %v147_v42, %v142_v18  ;;  %v227_v42 = vpop.permute.xlu0 %226 }
  0xb9   :  { %v163_v33 = vadd.f32 %v155_v27, %v111_v30 }
  0xbb   :  { %v187_v22 = vpop.permute.xlu1 %186  ;;  %v237_v45 = vpop.permute.xlu0 %236 }
  0xbc   :  { %v208_v24 = vadd.f32 %v187_v22, %v160_v21 }
  0xbe   :  { %v216_v28 = vmax.f32 %v208_v24, 0.0 }
  0xbf   :  { %v197_v29 = vpop.permute.xlu1 %196  ;;  %v317_v52 = vpop.permute.xlu0 %316 }
  0xc0   :  { %v222_v31 = vpack.c.bf16 %v217_v26, %v216_v28  ;;  %v210_v36 = vadd.f32 %v197_v29, %v162_v32 }
  0xc2   :  { %392 = vmatprep.subr.bf16.mxu0 %v222_v31  ;;  %v218_v40 = vmax.f32 %v210_v36, 0.0 }
  0xc3   :  { %393 = vmatpush3.bf16.msra.mxu0 %v222_v31  ;;  %v202_v37 = vpop.permute.xlu1 %201  ;;  %v327_v63 = vpop.permute.xlu0 %326 }
  0xc4   :  { %v211_v39 = vadd.f32 %v202_v37, %v163_v33 }
  0xc6   :  { %v219_v41 = vmax.f32 %v211_v39, 0.0 }
  0xc7   :  { %v232_v43 = vpop.permute.xlu1 %231  ;;  %v350_v10 = vpop.permute.xlu0 %349 }
  0xc8   :  { %v223_v44 = vpack.c.bf16 %v219_v41, %v218_v40  ;;  %v355_v12 = vrot.slane %v350_v10, %v102_v38 }
  0xca   :  { %394 = vmatprep.subr.bf16.mxu0 %v223_v44 }
  0xcb   :  { %395 = vmatpush3.bf16.msra.mxu0 %v223_v44  ;;  %v242_v46 = vpop.permute.xlu1 %241 }
  0xce   :  { %397 = vmatmul.mubr.msk.bf16.vlgmr.msra.gmra.mrb[0].mxu0 %vm254_vm0, %v414_v35 }
  0xcf   :  { %v322_v57 = vpop.permute.xlu1 %321 }
  0xd3   :  { %v332_v2 = vpop.permute.xlu1 %331 }
 0x1a1   :  { %v398_v47 = vpop.f32.mrb[0].mxu0 }
 0x1a2   :  { %v295_v48 = vpop.f32.mrb[1].mxu0  ;;  %v304_v49 = vadd.f32 %v398_v47, %v237_v45 }
 0x1a3   :  { %v296_v50 = vadd.f32 %v295_v48, %v227_v42  ;;  %v399_v51 = vpop.f32.mrb[2].mxu0 }
 0x1a4   :  { %v298_v53 = vpop.f32.mrb[3].mxu0  ;;  %v307_v55 = vadd.f32 %v399_v51, %v242_v46  ;;  %v312_v58 = vmax.f32 %v304_v49, 0.0 }
 0x1a5   :  { %v310_v54 = vmax.f32 %v296_v50, 0.0  ;;  %v299_v56 = vadd.f32 %v298_v53, %v232_v43 }
 0x1a6   :  { %v313_v61 = vmax.f32 %v307_v55, 0.0  ;;  %v336_v0 = vmul.f32 %v327_v63, %v312_v58 }
 0x1a7   :  { %v311_v59 = vmax.f32 %v299_v56, 0.0  ;;  %v334_v60 = vmul.f32 %v317_v52, %v310_v54 }
 0x1a8   :  { %v337_v3 = vmul.f32 %v332_v2, %v313_v61 }
 0x1a9   :  { %v335_v62 = vmul.f32 %v322_v57, %v311_v59 }
 0x1ab   :  { %v338_v1 = vadd.f32 %v335_v62, %v334_v60 }
 0x1ad   :  { %v339_v4 = vadd.f32 %v338_v1, %v336_v0 }
 0x1af   :  { %v340_v5 = vadd.f32 %v339_v4, %v337_v3 }
 0x1b1   :  { %v341_v6 = vrot.slane %v340_v5, 4 }
 0x1b3   :  { %v342_v7 = vadd.f32 %v341_v6, %v340_v5 }
 0x1b5   :  { %v343_v8 = vrot.slane %v342_v7, 2 }
 0x1b7   :  { %v344_v9 = vadd.f32 %v343_v8, %v342_v7 }
 0x1b9   :  { %v345_v11 = vrot.slane %v344_v9, 1 }
 0x1bb   :  { %v346_v13 = vadd.f32 %v345_v11, %v344_v9 }
 0x1bd   :  { %v356_v14 = vadd.f32 %v355_v12, %v346_v13 }
 0x1bf   :  { %v357_v15 = vsub.f32 0.0, %v356_v14 }
 0x1c1   :  { %v358_v16 = vmul.f32 1.442695, %v357_v15 }
 0x1c3   :  { %415 = vpow2.f32 %v358_v16 }
 0x1cd   :  { %v416_v17 = vpop.eup %415 }
 0x1ce   :  { %v360_v18 = vadd.f32 1.0, %v416_v17 }
 0x1d0   :  { %417 = vrcp.f32 %v360_v18 }
 0x1da   :  { %v418_v19 = vpop.eup %417 }
 0x1db   :  { %363 = vst [vmem:[#allocation3] sm:$0x1] %v418_v19 }
 0x1dc   :  { %430 = shalt.err (!%p427_p4)
}
 0x1dd   :  { %s431_s9 = scalar_lea.hbm %s599_s7, 16 }
 0x1de   :  { %p432_p5 = scmp.ne.s32.totalorder %s599_s7, %s431_s9  ;;  %p435_p6 = scmp.lt.u32.totalorder %s431_s9, %s599_s7 }
 0x1e0   :  { %p437_p7 = pnand %p435_p6, %p432_p5 }
 0x1e2   :  { %440 = shalt.err (!%p437_p7)
}
 0x1e3   :  { %373 = dma.vmem_to_hbm [thread:$0]  %s371_s27, 16, %s599_s7, [#allocation4]  }
 0x1e4   :  { %441 = dma.done.wait [#allocation4], 16  }
 0x1e5   :  { %442 = vsyncadd [#allocation4], 4294967280 }
 0x1e6   :  { %377 = vsyncpa [#allocation4], 1 }

</bundles_post_ra>
